<compile_context>
chip_gen: v5e
topology: v5e:2x2
jax: 0.10.0
libtpu: 0.0.40
codegen_flags: <defaults>
</compile_context>

<pallas_src>
import jax
import jax.numpy as jnp
from jax.experimental import pallas as pl
from jax.experimental.pallas import tpu as pltpu


def _affine_kernel(x_ref, scale_ref, bias_ref, o_ref):
    # Memory-bound elementwise FMA on the VPU; compute in f32, cast at store.
    y = x_ref[...].astype(jnp.float32) * scale_ref[...] + bias_ref[...]
    o_ref[...] = y.astype(o_ref.dtype)


# Sublane granularity (second-minor block dim) by element size in bytes.
_SUBLANE = {4: 8, 2: 16, 1: 32}


def _round_down(x, m):
    return (x // m) * m


def _target_block_bytes():
    # v6e/v7x: ~4 MiB blocks amortize the fixed per-grid-step overhead against
    # their faster HBM; 4x block (double-buffered in + out) = 16 MiB stays
    # under the 32 MiB default scoped VMEM.  v5e: keep ~2 MiB so the footprint
    # stays well under its 16 MiB default scoped VMEM (2 MiB already reaches
    # ~85%+ of its HBM roofline).
    try:
        kind = jax.devices()[0].device_kind.lower()
    except Exception:
        return 2 << 20
    if "v5 lite" in kind or "v5e" in kind or "v5lite" in kind:
        return 2 << 20
    return 4 << 20


def _choose_tiles(rows, cols, itemsize, target_bytes):
    """Jointly size (tm, tn): lane-dense blocks near target_bytes, and >=2
    blocks on non-trivial tensors so both v7x TensorCores get work."""
    sub = _SUBLANE.get(itemsize, 8)
    total = rows * cols * itemsize
    if total > (512 << 10):
        # Force at least a 2-block grid for megacore sharding.
        target_bytes = min(target_bytes, total // 2)
    target_bytes = max(target_bytes, 1)

    row_bytes = cols * itemsize
    tm_min = rows if rows <= sub else sub

    # Prefer full-row blocks: one contiguous HBM DMA per block, no inner
    # column axis, scale/bias fetched once per row block.
    if tm_min * row_bytes <= target_bytes or cols <= 128:
        tm = max(tm_min, _round_down(target_bytes // max(row_bytes, 1), sub))
        if tm >= rows:
            tm = rows
        return tm, cols

    # Rows too wide for the budget: minimal sublane group, lane tiles of 128k.
    tm = tm_min
    tn = _round_down(target_bytes // max(tm * itemsize, 1), 128)
    tn = max(tn, 128)
    if tn >= cols:
        tn = cols
    return tm, tn


def shift_mean(x, mean, std, mode, *, donate=False):
    """Pallas equivalent of ShiftMean.forward(x, mode). x is NCHW."""
    B, C, H, W = x.shape
    assert mean.shape == (C,) and std.shape == (C,)
    dtype = x.dtype
    itemsize = jnp.dtype(dtype).itemsize

    mean32 = mean.astype(jnp.float32)
    std32 = std.astype(jnp.float32)
    if mode == "sub":
        scale = 1.0 / std32
        bias = -mean32 / std32
    elif mode == "add":
        scale = std32
        bias = mean32
    else:
        raise NotImplementedError(mode)

    N = H * W
    target = _target_block_bytes()

    # Layout choice: per-row (B*C, H*W) when H*W is lane-aligned; otherwise a
    # (B, C*H*W) view with per-element scale/bias so the store dim is larger
    # and lane utilization recovers. Large misaligned H*W keeps the main path
    # (the masked tail is a negligible fraction there).
    use_flat = (N % 128 != 0) and (N <= 8192)

    if not use_flat:
        rows, cols = B * C, N
        x2 = x.reshape(rows, cols)
        scale_a = jnp.tile(scale, B).reshape(rows, 1)     # row r -> channel r % C
        bias_a = jnp.tile(bias, B).reshape(rows, 1)
        tm, tn = _choose_tiles(rows, cols, itemsize, target)
        sb_block = (tm, 1)
        sb_map = lambda i, j: (i, 0)
    else:
        rows, cols = B, C * N
        x2 = x.reshape(rows, cols)
        scale_a = jnp.repeat(scale, N).reshape(1, cols)   # element e -> channel e // (H*W)
        bias_a = jnp.repeat(bias, N).reshape(1, cols)
        tm, tn = _choose_tiles(rows, cols, itemsize, target)
        sb_block = (1, tn)
        sb_map = lambda i, j: (0, j)

    grid = (pl.cdiv(rows, tm), pl.cdiv(cols, tn))

    out2 = pl.pallas_call(
        _affine_kernel,
        out_shape=jax.ShapeDtypeStruct((rows, cols), dtype),
        grid=grid,
        in_specs=[
            pl.BlockSpec((tm, tn), lambda i, j: (i, j)),  # x tile
            pl.BlockSpec(sb_block, sb_map),               # scale (f32)
            pl.BlockSpec(sb_block, sb_map),               # bias  (f32)
        ],
        out_specs=pl.BlockSpec((tm, tn), lambda i, j: (i, j)),
        compiler_params=pltpu.CompilerParams(
            dimension_semantics=("parallel", "parallel")
        ),
        input_output_aliases={0: 0} if donate else {},
    )(x2, scale_a, bias_a)

    return out2.reshape(B, C, H, W)


if __name__ == "__main__":
    # Small shapes consistent with the module: batch=2, channels=4, spatial=16.
    B, C, H, W = 2, 4, 16, 16
    key = jax.random.PRNGKey(0)
    x = jax.random.normal(key, (B, C, H, W), dtype=jnp.float32)

    # Deterministic per-channel statistics (module views them as (1, C, 1, 1)).
    mean = jnp.arange(1, C + 1, dtype=jnp.float32) * 0.5        # [0.5, 1.0, 1.5, 2.0]
    std = jnp.arange(1, C + 1, dtype=jnp.float32) * 0.25 + 1.0  # [1.25, 1.5, 1.75, 2.0]

    # 'sub' then 'add' (round trip), main lane-aligned path.
    y_sub = jax.block_until_ready(shift_mean(x, mean, std, "sub"))
    y_add = jax.block_until_ready(shift_mean(y_sub, mean, std, "add"))

    m4 = mean.reshape(1, C, 1, 1)
    s4 = std.reshape(1, C, 1, 1)
    ref_sub = (x - m4) / s4
    assert y_sub.shape == x.shape and y_sub.dtype == x.dtype
    assert jnp.allclose(y_sub, ref_sub, atol=1e-5, rtol=1e-5)
    assert jnp.allclose(y_add, y_sub * s4 + m4, atol=1e-5, rtol=1e-5)
    assert jnp.allclose(y_add, x, atol=1e-5, rtol=1e-5)          # round trip

    # Misaligned-spatial fallback path (H*W % 128 != 0 -> (B, C*H*W) layout).
    x_odd = jax.random.normal(jax.random.PRNGKey(1), (B, C, 7, 7), dtype=jnp.float32)
    y_odd = jax.block_until_ready(shift_mean(x_odd, mean, std, "sub"))
    assert jnp.allclose(y_odd, (x_odd - m4) / s4, atol=1e-5, rtol=1e-5)

    # bf16 input: f32 scale/bias + mixed-precision FMA, bf16 store.
    x_bf = x.astype(jnp.bfloat16)
    y_bf = jax.block_until_ready(shift_mean(x_bf, mean, std, "sub"))
    assert y_bf.dtype == jnp.bfloat16
    assert jnp.allclose(y_bf.astype(jnp.float32), ref_sub, atol=3e-2, rtol=3e-2)

    print("KERNEL_OK")
</pallas_src>

<mosaic_0001>
module attributes {stable_mosaic.version = 11 : i64} {
  func.func @_affine_kernel(%arg0: i32, %arg1: i32, %arg2: memref<8x256xf32, #tpu.memory_space<vmem>>, %arg3: memref<8x1xf32, #tpu.memory_space<vmem>>, %arg4: memref<8x1xf32, #tpu.memory_space<vmem>>, %arg5: memref<8x256xf32, #tpu.memory_space<vmem>>) attributes {dimension_semantics = [#tpu.dimension_semantics<parallel>, #tpu.dimension_semantics<parallel>], iteration_bounds = array<i64: 1, 1>, scalar_prefetch = 0 : i64, scratch_operands = 0 : i64, tpu.core_type = #tpu.core_type<tc>, window_params = [{transform_indices = @transform_0, window_bounds = array<i64: 8, 256>}, {transform_indices = @transform_1, window_bounds = array<i64: 8, 1>}, {transform_indices = @transform_2, window_bounds = array<i64: 8, 1>}, {transform_indices = @transform_3, window_bounds = array<i64: 8, 256>}]} {
    %c0 = arith.constant 0 : index
    %c0_0 = arith.constant 0 : index
    %0 = vector.load %arg2[%c0, %c0_0] : memref<8x256xf32, #tpu.memory_space<vmem>>, vector<8x256xf32>
    %c0_1 = arith.constant 0 : index
    %c0_2 = arith.constant 0 : index
    %1 = vector.load %arg3[%c0_1, %c0_2] : memref<8x1xf32, #tpu.memory_space<vmem>>, vector<8x1xf32>
    %2 = vector.broadcast %1 : vector<8x1xf32> to vector<8x256xf32>
    %3 = arith.mulf %0, %2 : vector<8x256xf32>
    %c0_3 = arith.constant 0 : index
    %c0_4 = arith.constant 0 : index
    %4 = vector.load %arg4[%c0_3, %c0_4] : memref<8x1xf32, #tpu.memory_space<vmem>>, vector<8x1xf32>
    %5 = vector.broadcast %4 : vector<8x1xf32> to vector<8x256xf32>
    %6 = arith.addf %3, %5 : vector<8x256xf32>
    %c0_5 = arith.constant 0 : index
    %c0_6 = arith.constant 0 : index
    %7 = vector.load %arg5[%c0_5, %c0_6] : memref<8x256xf32, #tpu.memory_space<vmem>>, vector<8x256xf32>
    tpu.vector_store %arg5[%c0_5, %c0_6], %6 {strides = array<i32>} : memref<8x256xf32, #tpu.memory_space<vmem>>, vector<8x256xf32>,
    return
  }
  func.func @transform_0(%arg0: i32, %arg1: i32) -> (i32, i32) {
    %c0_i32 = arith.constant 0 : i32
    return %arg0, %arg1 : i32, i32
  }
  func.func @transform_1(%arg0: i32, %arg1: i32) -> (i32, i32) {
    %c0_i32 = arith.constant 0 : i32
    %c0_i32_0 = arith.constant 0 : i32
    return %arg0, %c0_i32 : i32, i32
  }
  func.func @transform_2(%arg0: i32, %arg1: i32) -> (i32, i32) {
    %c0_i32 = arith.constant 0 : i32
    %c0_i32_0 = arith.constant 0 : i32
    return %arg0, %c0_i32 : i32, i32
  }
  func.func @transform_3(%arg0: i32, %arg1: i32) -> (i32, i32) {
    %c0_i32 = arith.constant 0 : i32
    return %arg0, %arg1 : i32, i32
  }
}

</mosaic_0001>

<bundles_post_ra>
// kernel: tpu_custom_call.1
= control target key start
LH: loop header
LB: loop body
LE: loop exit
PB: predicated region body
PF: predicated region fallthrough
CT: control target
= control target key end

     0   :  { %s117_s0 = inlined_call_operand.vmem [shape: f32[8,256], index: 0, kind: input, shape index: {}]   ;;  %s118_s1 = inlined_call_operand.vmem [shape: f32[8,1], index: 1, kind: input, shape index: {}]   ;;  %s119_s2 = inlined_call_operand.vmem [shape: f32[8,1], index: 2, kind: input, shape index: {}]   ;;  %s120_s3 = inlined_call_operand.hbm [shape: f32[8,256], index: 3, kind: output, shape index: {}]  }
   0x1   :  { %v17_v0 = vld [vmem:[%s118_s1] sm:$0xff] }
   0x2   :  { %8 = vsyncpa [#allocation3], 0  ;;  %v80_v1 = vmov 0   ;;  %v25_v2 = vld [vmem:[%s119_s2] sm:$0xff]  ;;  %v16_v5 = vld [vmem:[%s117_s0 + $0x8] sm:$0xff]  ;;  %s81_s1 = smov [#allocation2]  }
   0x3   :  { %53 = vset.pattern.permute.xlu0 %v80_v1  ;;  %v15_v4 = vld [vmem:[%s117_s0] sm:$0xff]  ;;  %s40_s20 = sshll.u32 %s81_s1, 4  ;;  %s42_s23 = sshll.u32 %s120_s3, 4  ;;  %s41_s20 = int_to_ptr.vmem [resolvable:$true] %s40_s20  ;;  %s43_s23 = int_to_ptr.hbm [resolvable:$true] %s42_s23 }
   0x4   :  { %20 = vperm.xlu0 %53, %v17_v0  }
   0xc   :  { %28 = vperm.xlu0 %53, %v25_v2  }
  0x76   :  { %v21_v3 = vpop.permute.xlu0 %20 }
  0x77   :  { %v23_v6 = vmul.f32 %v21_v3, %v15_v4  ;;  %v24_v7 = vmul.f32 %v21_v3, %v16_v5 }
  0x7e   :  { %v29_v8 = vpop.permute.xlu0 %28 }
  0x7f   :  { %v31_v9 = vadd.f32 %v29_v8, %v23_v6  ;;  %v32_v10 = vadd.f32 %v29_v8, %v24_v7 }
  0x81   :  { %33 = vst [vmem:[#allocation2] sm:$0xff] %v31_v9 }
  0x82   :  { %34 = vst [vmem:[#allocation2 + $0x8] sm:$0xff] %v32_v10 }
  0x83   :  { %45 = dma.vmem_to_hbm [thread:$0]  %s41_s20, 256, %s43_s23, [#allocation3]  }
  0x84   :  { %78 = dma.done.wait [#allocation3], 256  }
  0x85   :  { %79 = vsyncadd [#allocation3], 4294967040 }
  0x86   :  { %50 = vsyncpa [#allocation3], 1 }

</bundles_post_ra>
